<compile_context>
chip_gen: v5e
topology: v5e:2x2
jax: 0.10.0
libtpu: 0.0.40
codegen_flags: <defaults>
</compile_context>

<pallas_src>
import functools

import jax
import jax.numpy as jnp
from jax.experimental import pallas as pl
from jax.experimental.pallas import tpu as pltpu


# ---------------------------------------------------------------------------
# Fused kernel
# ---------------------------------------------------------------------------
def _contour_kernel(x_ref, o_ref, *, k):
    """x_ref: (nc_t, hr*k, Wc) input tile; o_ref: (nc_t, 1) f32 running sum of squares."""
    @pl.when(pl.program_id(1) == 0)
    def _init():
        o_ref[...] = jnp.zeros_like(o_ref)

    nc_t, hk, Wc = x_ref.shape
    hr = hk // k

    # ---- row pooling: per-window-row max / min via k sublane-strided loads ----
    cur = x_ref[:, pl.ds(0, hr, stride=k), :]
    rmax = cur
    rmin = cur
    for i in range(1, k):                       # unrolled chain of plain VPU vmax/vmin
        cur = x_ref[:, pl.ds(i, hr, stride=k), :]
        rmax = jnp.maximum(rmax, cur)
        rmin = jnp.minimum(rmin, cur)
    rmax = rmax.astype(jnp.float32)             # max/min exact in input dtype; f32 after
    rmin = rmin.astype(jnp.float32)

    # ---- column pooling: static lane-offset slices; window results at lane % k == 0 ----
    L = Wc - (k - 1)                            # = (Wo - 1) * k + 1
    cmax = rmax[:, :, 0:L]
    cmin = rmin[:, :, 0:L]
    for j in range(1, k):
        cmax = jnp.maximum(cmax, rmax[:, :, j:j + L])
        cmin = jnp.minimum(cmin, rmin[:, :, j:j + L])

    c_d = cmax - cmin                           # == maxpool(x) + maxpool(-x) at anchors
    lane = jax.lax.broadcasted_iota(jnp.int32, c_d.shape, 2)
    sq = jnp.where(lane % k == 0, c_d * c_d, 0.0)       # keep only window anchors
    per_row = jnp.sum(sq, axis=-1, keepdims=True)        # (nc_t, hr, 1)
    o_ref[...] += jnp.sum(per_row, axis=1)                # (nc_t, 1), f32 accumulation


# ---------------------------------------------------------------------------
# Tile selection (block dims must divide the array dims; dims in the second-to-last
# block position must be a multiple of 8 or the full extent)
# ---------------------------------------------------------------------------
def _choose_tiles(NC, Ho, k, Wc, itemsize, block_budget=8 * 1024 * 1024):
    def block_bytes(nc_t, hr):
        return nc_t * hr * k * Wc * itemsize

    nc_opts = [d for d in range(8, NC + 1, 8) if NC % d == 0] or [NC]
    hr_opts = sorted({d for d in range(8, Ho + 1, 8) if Ho % d == 0} | {Ho})

    nc_t = nc_opts[0]
    # Prefer the tallest window-row slab that fits the budget (hr == Ho gives one
    # contiguous HBM run per image).
    hr = hr_opts[0]
    for h in hr_opts:
        if block_bytes(nc_t, h) <= block_budget:
            hr = max(hr, h)
    # Grow nc_t while staying in budget, but keep >= 2 blocks on the parallel NC axis
    # (when possible) so both v7x TensorCores get work.
    for n in nc_opts:
        if block_bytes(n, hr) <= block_budget and (NC // n >= 2 or n == nc_opts[0]):
            nc_t = max(nc_t, n)
    return nc_t, hr


# ---------------------------------------------------------------------------
# Public wrapper
# ---------------------------------------------------------------------------
def contour_regularization_loss(x, d: int = 4):
    """x: (N, C, H, W).  Returns the scalar ContourRegularizationLoss (float32)."""
    k = 2 * d + 1
    N, C, H, W = x.shape
    Ho, Wo = H // k, W // k
    assert Ho >= 1 and Wo >= 1, "spatial dims must be >= kernel size (2d+1)"
    NC = N * C
    Hc, Wc = Ho * k, Wo * k

    xf = x.reshape(NC, H, W)                    # free reshape (collapse leading dims)
    if H != Hc or W != Wc:                      # VALID pooling: drop the remainder
        xf = xf[:, :Hc, :Wc]

    nc_t, hr = _choose_tiles(NC, Ho, k, Wc, x.dtype.itemsize)

    sumsq = pl.pallas_call(
        functools.partial(_contour_kernel, k=k),
        out_shape=jax.ShapeDtypeStruct((NC, 1), jnp.float32),
        grid_spec=pltpu.PrefetchScalarGridSpec(
            num_scalar_prefetch=0,
            grid=(NC // nc_t, Ho // hr),
            in_specs=[pl.BlockSpec((nc_t, hr * k, Wc), lambda c, h: (c, h, 0))],
            out_specs=pl.BlockSpec((nc_t, 1), lambda c, h: (c, 0)),
        ),
        compiler_params=pltpu.CompilerParams(
            dimension_semantics=("parallel", "arbitrary"),
            vmem_limit_bytes=48 * 1024 * 1024),
    )(xf)

    # Tiny finalize in XLA: L2 norm per (n, c), then mean over (N, C).
    return jnp.mean(jnp.sqrt(sumsq[:, 0]))


# ---------------------------------------------------------------------------
# Pure-JAX reference mirroring the PyTorch semantics (for verification)
# ---------------------------------------------------------------------------
def _reference_loss(x, d: int = 4):
    k = 2 * d + 1
    mp = lambda v: jax.lax.reduce_window(
        v, -jnp.inf, jax.lax.max, (1, 1, k, k), (1, 1, k, k), "VALID"
    )
    c_d = mp(x) + mp(-x)
    norms = jnp.sqrt(jnp.sum(c_d * c_d, axis=(2, 3)))
    return jnp.mean(norms)


if __name__ == "__main__":
    # ContourRegularizationLoss has no learnable parameters (d=4 -> 9x9 pooling window).
    keys = jax.random.split(jax.random.PRNGKey(0), 2)

    # Primary small check: N=2, C=4, H=W=18 (2x2 pooled windows, single-block grid).
    x1 = jax.random.normal(keys[0], (2, 4, 18, 18), dtype=jnp.float32)
    out1 = jax.block_until_ready(contour_regularization_loss(x1, d=4))
    ref1 = jax.block_until_ready(_reference_loss(x1, d=4))
    assert jnp.allclose(out1, ref1, rtol=1e-5, atol=1e-5), (out1, ref1)

    # Secondary check exercising a multi-block grid on the parallel NC axis.
    x2 = jax.random.normal(keys[1], (2, 8, 216, 216), dtype=jnp.float32)
    out2 = jax.block_until_ready(contour_regularization_loss(x2, d=4))
    ref2 = jax.block_until_ready(_reference_loss(x2, d=4))
    assert jnp.allclose(out2, ref2, rtol=1e-4, atol=1e-5), (out2, ref2)

    print("KERNEL_OK")
</pallas_src>

<mosaic_0001>
module attributes {stable_mosaic.version = 11 : i64} {
  func.func @_contour_kernel(%arg0: i32, %arg1: i32, %arg2: memref<8x18x18xf32, #tpu.memory_space<vmem>>, %arg3: memref<8x1xf32, #tpu.memory_space<vmem>>) attributes {dimension_semantics = [#tpu.dimension_semantics<parallel>, #tpu.dimension_semantics<arbitrary>], iteration_bounds = array<i64: 1, 1>, scalar_prefetch = 0 : i64, scratch_operands = 0 : i64, tpu.core_type = #tpu.core_type<tc>, window_params = [{transform_indices = @transform_0, window_bounds = array<i64: 8, 18, 18>}, {transform_indices = @transform_1, window_bounds = array<i64: 8, 1>}]} {
    %c0_i32 = arith.constant 0 : i32
    %0 = arith.cmpi eq, %arg1, %c0_i32 : i32
    %1 = arith.extui %0 : i1 to i32
    %c0_i32_0 = arith.constant 0 : i32
    %2 = arith.cmpi ne, %1, %c0_i32_0 : i32
    scf.if %2 {
      %cst_30 = arith.constant 0.000000e+00 : f32
      %91 = vector.broadcast %cst_30 : f32 to vector<8x1xf32>
      %c0_31 = arith.constant 0 : index
      %c0_32 = arith.constant 0 : index
      %92 = vector.load %arg3[%c0_31, %c0_32] : memref<8x1xf32, #tpu.memory_space<vmem>>, vector<8x1xf32>
      tpu.vector_store %arg3[%c0_31, %c0_32], %91 {strides = array<i32>} : memref<8x1xf32, #tpu.memory_space<vmem>>, vector<8x1xf32>,
    } else {
    }
    %c0 = arith.constant 0 : index
    %c0_1 = arith.constant 0 : index
    %c0_2 = arith.constant 0 : index
    %3 = tpu.strided_load %arg2[%c0, %c0_1, %c0_2] {strides = array<i32: 1, 9, 1>} : memref<8x18x18xf32, #tpu.memory_space<vmem>>, vector<8x2x18xf32>
    %c0_3 = arith.constant 0 : index
    %c1 = arith.constant 1 : index
    %c0_4 = arith.constant 0 : index
    %4 = tpu.strided_load %arg2[%c0_3, %c1, %c0_4] {strides = array<i32: 1, 9, 1>} : memref<8x18x18xf32, #tpu.memory_space<vmem>>, vector<8x2x18xf32>
    %5 = arith.maximumf %3, %4 : vector<8x2x18xf32>
    %6 = arith.minimumf %3, %4 : vector<8x2x18xf32>
    %c0_5 = arith.constant 0 : index
    %c2 = arith.constant 2 : index
    %c0_6 = arith.constant 0 : index
    %7 = tpu.strided_load %arg2[%c0_5, %c2, %c0_6] {strides = array<i32: 1, 9, 1>} : memref<8x18x18xf32, #tpu.memory_space<vmem>>, vector<8x2x18xf32>
    %8 = arith.maximumf %5, %7 : vector<8x2x18xf32>
    %9 = arith.minimumf %6, %7 : vector<8x2x18xf32>
    %c0_7 = arith.constant 0 : index
    %c3 = arith.constant 3 : index
    %c0_8 = arith.constant 0 : index
    %10 = tpu.strided_load %arg2[%c0_7, %c3, %c0_8] {strides = array<i32: 1, 9, 1>} : memref<8x18x18xf32, #tpu.memory_space<vmem>>, vector<8x2x18xf32>
    %11 = arith.maximumf %8, %10 : vector<8x2x18xf32>
    %12 = arith.minimumf %9, %10 : vector<8x2x18xf32>
    %c0_9 = arith.constant 0 : index
    %c4 = arith.constant 4 : index
    %c0_10 = arith.constant 0 : index
    %13 = tpu.strided_load %arg2[%c0_9, %c4, %c0_10] {strides = array<i32: 1, 9, 1>} : memref<8x18x18xf32, #tpu.memory_space<vmem>>, vector<8x2x18xf32>
    %14 = arith.maximumf %11, %13 : vector<8x2x18xf32>
    %15 = arith.minimumf %12, %13 : vector<8x2x18xf32>
    %c0_11 = arith.constant 0 : index
    %c5 = arith.constant 5 : index
    %c0_12 = arith.constant 0 : index
    %16 = tpu.strided_load %arg2[%c0_11, %c5, %c0_12] {strides = array<i32: 1, 9, 1>} : memref<8x18x18xf32, #tpu.memory_space<vmem>>, vector<8x2x18xf32>
    %17 = arith.maximumf %14, %16 : vector<8x2x18xf32>
    %18 = arith.minimumf %15, %16 : vector<8x2x18xf32>
    %c0_13 = arith.constant 0 : index
    %c6 = arith.constant 6 : index
    %c0_14 = arith.constant 0 : index
    %19 = tpu.strided_load %arg2[%c0_13, %c6, %c0_14] {strides = array<i32: 1, 9, 1>} : memref<8x18x18xf32, #tpu.memory_space<vmem>>, vector<8x2x18xf32>
    %20 = arith.maximumf %17, %19 : vector<8x2x18xf32>
    %21 = arith.minimumf %18, %19 : vector<8x2x18xf32>
    %c0_15 = arith.constant 0 : index
    %c7 = arith.constant 7 : index
    %c0_16 = arith.constant 0 : index
    %22 = tpu.strided_load %arg2[%c0_15, %c7, %c0_16] {strides = array<i32: 1, 9, 1>} : memref<8x18x18xf32, #tpu.memory_space<vmem>>, vector<8x2x18xf32>
    %23 = arith.maximumf %20, %22 : vector<8x2x18xf32>
    %24 = arith.minimumf %21, %22 : vector<8x2x18xf32>
    %c0_17 = arith.constant 0 : index
    %c8 = arith.constant 8 : index
    %c0_18 = arith.constant 0 : index
    %25 = tpu.strided_load %arg2[%c0_17, %c8, %c0_18] {strides = array<i32: 1, 9, 1>} : memref<8x18x18xf32, #tpu.memory_space<vmem>>, vector<8x2x18xf32>
    %26 = arith.maximumf %23, %25 : vector<8x2x18xf32>
    %27 = arith.minimumf %24, %25 : vector<8x2x18xf32>
    %28 = vector.extract_strided_slice %26 {offsets = [0, 0, 0], sizes = [8, 2, 10], strides = [1, 1, 1]} : vector<8x2x18xf32> to vector<8x2x10xf32>
    %29 = vector.extract_strided_slice %27 {offsets = [0, 0, 0], sizes = [8, 2, 10], strides = [1, 1, 1]} : vector<8x2x18xf32> to vector<8x2x10xf32>
    %30 = vector.extract_strided_slice %26 {offsets = [0, 0, 1], sizes = [8, 2, 10], strides = [1, 1, 1]} : vector<8x2x18xf32> to vector<8x2x10xf32>
    %31 = arith.maximumf %28, %30 : vector<8x2x10xf32>
    %32 = vector.extract_strided_slice %27 {offsets = [0, 0, 1], sizes = [8, 2, 10], strides = [1, 1, 1]} : vector<8x2x18xf32> to vector<8x2x10xf32>
    %33 = arith.minimumf %29, %32 : vector<8x2x10xf32>
    %34 = vector.extract_strided_slice %26 {offsets = [0, 0, 2], sizes = [8, 2, 10], strides = [1, 1, 1]} : vector<8x2x18xf32> to vector<8x2x10xf32>
    %35 = arith.maximumf %31, %34 : vector<8x2x10xf32>
    %36 = vector.extract_strided_slice %27 {offsets = [0, 0, 2], sizes = [8, 2, 10], strides = [1, 1, 1]} : vector<8x2x18xf32> to vector<8x2x10xf32>
    %37 = arith.minimumf %33, %36 : vector<8x2x10xf32>
    %38 = vector.extract_strided_slice %26 {offsets = [0, 0, 3], sizes = [8, 2, 10], strides = [1, 1, 1]} : vector<8x2x18xf32> to vector<8x2x10xf32>
    %39 = arith.maximumf %35, %38 : vector<8x2x10xf32>
    %40 = vector.extract_strided_slice %27 {offsets = [0, 0, 3], sizes = [8, 2, 10], strides = [1, 1, 1]} : vector<8x2x18xf32> to vector<8x2x10xf32>
    %41 = arith.minimumf %37, %40 : vector<8x2x10xf32>
    %42 = vector.extract_strided_slice %26 {offsets = [0, 0, 4], sizes = [8, 2, 10], strides = [1, 1, 1]} : vector<8x2x18xf32> to vector<8x2x10xf32>
    %43 = arith.maximumf %39, %42 : vector<8x2x10xf32>
    %44 = vector.extract_strided_slice %27 {offsets = [0, 0, 4], sizes = [8, 2, 10], strides = [1, 1, 1]} : vector<8x2x18xf32> to vector<8x2x10xf32>
    %45 = arith.minimumf %41, %44 : vector<8x2x10xf32>
    %46 = vector.extract_strided_slice %26 {offsets = [0, 0, 5], sizes = [8, 2, 10], strides = [1, 1, 1]} : vector<8x2x18xf32> to vector<8x2x10xf32>
    %47 = arith.maximumf %43, %46 : vector<8x2x10xf32>
    %48 = vector.extract_strided_slice %27 {offsets = [0, 0, 5], sizes = [8, 2, 10], strides = [1, 1, 1]} : vector<8x2x18xf32> to vector<8x2x10xf32>
    %49 = arith.minimumf %45, %48 : vector<8x2x10xf32>
    %50 = vector.extract_strided_slice %26 {offsets = [0, 0, 6], sizes = [8, 2, 10], strides = [1, 1, 1]} : vector<8x2x18xf32> to vector<8x2x10xf32>
    %51 = arith.maximumf %47, %50 : vector<8x2x10xf32>
    %52 = vector.extract_strided_slice %27 {offsets = [0, 0, 6], sizes = [8, 2, 10], strides = [1, 1, 1]} : vector<8x2x18xf32> to vector<8x2x10xf32>
    %53 = arith.minimumf %49, %52 : vector<8x2x10xf32>
    %54 = vector.extract_strided_slice %26 {offsets = [0, 0, 7], sizes = [8, 2, 10], strides = [1, 1, 1]} : vector<8x2x18xf32> to vector<8x2x10xf32>
    %55 = arith.maximumf %51, %54 : vector<8x2x10xf32>
    %56 = vector.extract_strided_slice %27 {offsets = [0, 0, 7], sizes = [8, 2, 10], strides = [1, 1, 1]} : vector<8x2x18xf32> to vector<8x2x10xf32>
    %57 = arith.minimumf %53, %56 : vector<8x2x10xf32>
    %58 = vector.extract_strided_slice %26 {offsets = [0, 0, 8], sizes = [8, 2, 10], strides = [1, 1, 1]} : vector<8x2x18xf32> to vector<8x2x10xf32>
    %59 = arith.maximumf %55, %58 : vector<8x2x10xf32>
    %60 = vector.extract_strided_slice %27 {offsets = [0, 0, 8], sizes = [8, 2, 10], strides = [1, 1, 1]} : vector<8x2x18xf32> to vector<8x2x10xf32>
    %61 = arith.minimumf %57, %60 : vector<8x2x10xf32>
    %62 = arith.subf %59, %61 : vector<8x2x10xf32>
    %63 = tpu.iota {dimensions = array<i32: 2>} : vector<8x2x10xi32>
    %c9_i32 = arith.constant 9 : i32
    %c0_i32_19 = arith.constant 0 : i32
    %64 = arith.cmpi eq, %c9_i32, %c0_i32_19 : i32
    %c1_i32 = arith.constant 1 : i32
    %65 = arith.select %64, %c1_i32, %c9_i32 : i32
    %66 = vector.broadcast %65 : i32 to vector<8x2x10xi32>
    %67 = arith.remsi %63, %66 : vector<8x2x10xi32>
    %c0_i32_20 = arith.constant 0 : i32
    %68 = vector.broadcast %c0_i32_20 : i32 to vector<8x2x10xi32>
    %69 = arith.cmpi ne, %67, %68 : vector<8x2x10xi32>
    %c0_i32_21 = arith.constant 0 : i32
    %70 = vector.broadcast %c0_i32_21 : i32 to vector<8x2x10xi32>
    %71 = arith.cmpi slt, %67, %70 : vector<8x2x10xi32>
    %c0_i32_22 = arith.constant 0 : i32
    %72 = arith.cmpi slt, %65, %c0_i32_22 : i32
    %73 = vector.broadcast %72 : i1 to vector<8x2x10xi1>
    %74 = vector.broadcast %73 : vector<8x2x10xi1> to vector<8x2x10xi1>
    %75 = arith.xori %71, %74 : vector<8x2x10xi1>
    %76 = arith.andi %75, %69 : vector<8x2x10xi1>
    %77 = vector.broadcast %65 : i32 to vector<8x2x10xi32>
    %78 = arith.addi %67, %77 : vector<8x2x10xi32>
    %79 = arith.select %76, %78, %67 : vector<8x2x10xi1>, vector<8x2x10xi32>
    %c0_i32_23 = arith.constant 0 : i32
    %80 = vector.broadcast %c0_i32_23 : i32 to vector<8x2x10xi32>
    %81 = arith.cmpi eq, %79, %80 : vector<8x2x10xi32>
    %82 = arith.mulf %62, %62 : vector<8x2x10xf32>
    %cst = arith.constant 0.000000e+00 : f32
    %83 = vector.broadcast %cst : f32 to vector<8x2x10xf32>
    %84 = arith.select %81, %82, %83 : vector<8x2x10xi1>, vector<8x2x10xf32>
    %cst_24 = arith.constant dense<0.000000e+00> : vector<8x2xf32>
    %85 = vector.multi_reduction <add>, %84, %cst_24 [2] : vector<8x2x10xf32> to vector<8x2xf32>
    %86 = vector.shape_cast %85 : vector<8x2xf32> to vector<8x2x1xf32>
    %c0_25 = arith.constant 0 : index
    %c0_26 = arith.constant 0 : index
    %87 = vector.load %arg3[%c0_25, %c0_26] : memref<8x1xf32, #tpu.memory_space<vmem>>, vector<8x1xf32>
    %cst_27 = arith.constant dense<0.000000e+00> : vector<8x1xf32>
    %88 = vector.multi_reduction <add>, %86, %cst_27 [1] : vector<8x2x1xf32> to vector<8x1xf32>
    %89 = arith.addf %87, %88 : vector<8x1xf32>
    %c0_28 = arith.constant 0 : index
    %c0_29 = arith.constant 0 : index
    %90 = vector.load %arg3[%c0_28, %c0_29] : memref<8x1xf32, #tpu.memory_space<vmem>>, vector<8x1xf32>
    tpu.vector_store %arg3[%c0_28, %c0_29], %89 {strides = array<i32>} : memref<8x1xf32, #tpu.memory_space<vmem>>, vector<8x1xf32>,
    return
  }
  func.func @transform_0(%arg0: i32, %arg1: i32) -> (i32, i32, i32) {
    %c0_i32 = arith.constant 0 : i32
    %c0_i32_0 = arith.constant 0 : i32
    return %arg0, %arg1, %c0_i32 : i32, i32, i32
  }
  func.func @transform_1(%arg0: i32, %arg1: i32) -> (i32, i32) {
    %c0_i32 = arith.constant 0 : i32
    %c0_i32_0 = arith.constant 0 : i32
    return %arg0, %c0_i32 : i32, i32
  }
}

</mosaic_0001>

<bundles_post_ra>
// kernel: tpu_custom_call.1
= control target key start
LH: loop header
LB: loop body
LE: loop exit
PB: predicated region body
PF: predicated region fallthrough
CT: control target
= control target key end

     0   :  { %s1068_s4 = smov 127   ;;  %s1071_s9 = smov 124   ;;  %vm874_vm6 = vcmask 74752   ;;  %vm12_vm7 = vcmask 7168   ;;  %vm900_vm8 = vcmask 1041408   ;;  %vm965_vm9 = vcmask 1041409   ;;  %s2014_s0 = inlined_call_operand.vmem [shape: f32[8,18,18], index: 0, kind: input, shape index: {}]   ;;  %s2015_s1 = inlined_call_operand.vmem [shape: f32[8,1], index: 1, kind: output, shape index: {}]  }
   0x1   :  { %v1091_v0 = vld [vmem:[%s2014_s0 + $0x60] ss:$9 sm:$0x3]  ;;  %v1096_v1 = vld [vmem:[%s2014_s0 + $0x61] ss:$9 sm:$0x3] }
   0x2   :  { %v49_v2 = vmax.f32 %v1091_v0, %v1096_v1  ;;  %v1103_v3 = vld [vmem:[%s2014_s0 + $0x62] ss:$9 sm:$0x3]  ;;  %v1108_v4 = vld [vmem:[%s2014_s0 + $0x63] ss:$9 sm:$0x3] }
   0x3   :  { %v1114_v6 = vld [vmem:[%s2014_s0 + $0x64] ss:$9 sm:$0x3]  ;;  %v1119_v7 = vld [vmem:[%s2014_s0 + $0x30] ss:$9 sm:$0x3] }
   0x4   :  { %v81_v5 = vmax.f32 %v49_v2, %v1103_v3  ;;  %v1125_v9 = vld [vmem:[%s2014_s0 + $0x31] ss:$9 sm:$0x3]  ;;  %v1130_v10 = vld [vmem:[%s2014_s0 + $0x32] ss:$9 sm:$0x3] }
   0x5   :  { %v1135_v11 = vld [vmem:[%s2014_s0 + $0x65] ss:$9 sm:$0x3]  ;;  %v47_v12 = vmax.f32 %v1119_v7, %v1125_v9  ;;  %v1143_v14 = vld [vmem:[%s2014_s0 + $0x33] ss:$9 sm:$0x3]  ;;  %v55_v57 = vmin.f32 %v1119_v7, %v1125_v9 }
   0x6   :  { %v113_v8 = vmax.f32 %v81_v5, %v1108_v4  ;;  %v1148_v15 = vld [vmem:[%s2014_s0 + $0x66] ss:$9 sm:$0x3]  ;;  %v1154_v17 = vld [vmem:[%s2014_s0 + $0x34] ss:$9 sm:$0x3] }
   0x7   :  { %v79_v16 = vmax.f32 %v47_v12, %v1130_v10  ;;  %v14_v19 = vld [vmem:[%s2014_s0] ss:$9 sm:$0x3]  ;;  %v994_v20 = vld [vmem:[%s2014_s0 + $0x1] ss:$9 sm:$0x3] }
   0x8   :  { %v145_v13 = vmax.f32 %v113_v8, %v1114_v6  ;;  %v1166_v21 = vld [vmem:[%s2014_s0 + $0x67] ss:$9 sm:$0x3]  ;;  %v45_v23 = vmax.f32 %v14_v19, %v994_v20  ;;  %v1002_v24 = vld [vmem:[%s2014_s0 + $0x2] ss:$9 sm:$0x3]  ;;  %v53_v25 = vmin.f32 %v14_v19, %v994_v20 }
   0x9   :  { %v111_v22 = vmax.f32 %v79_v16, %v1143_v14  ;;  %v1176_v27 = vld [vmem:[%s2014_s0 + $0x35] ss:$9 sm:$0x3]  ;;  %v1010_v28 = vld [vmem:[%s2014_s0 + $0x3] ss:$9 sm:$0x3] }
   0xa   :  { %v177_v18 = vmax.f32 %v145_v13, %v1135_v11  ;;  %v1184_v29 = vld [vmem:[%s2014_s0 + $0x68] ss:$9 sm:$0x3]  ;;  %v1190_v31 = vld [vmem:[%s2014_s0 + $0x36] ss:$9 sm:$0x3]  ;;  %v77_v32 = vmax.f32 %v45_v23, %v1002_v24  ;;  %v85_v33 = vmin.f32 %v53_v25, %v1002_v24  ;;  %v87_v23 = vmin.f32 %v55_v57, %v1130_v10 }
   0xb   :  { %v143_v30 = vmax.f32 %v111_v22, %v1154_v17  ;;  %v1018_v35 = vld [vmem:[%s2014_s0 + $0x4] ss:$9 sm:$0x3]  ;;  %v1199_v36 = vld [vmem:[%s2014_s0 + $0x78] ss:$9 sm:$0x3] }
   0xc   :  { %v209_v26 = vmax.f32 %v177_v18, %v1148_v15  ;;  %v109_v38 = vmax.f32 %v77_v32, %v1010_v28  ;;  %v1205_v39 = vld [vmem:[%s2014_s0 + $0x79] ss:$9 sm:$0x3]  ;;  %v1210_v40 = vld [vmem:[%s2014_s0 + $0x7a] ss:$9 sm:$0x3]  ;;  %v117_v45 = vmin.f32 %v85_v33, %v1010_v28 }
   0xd   :  { %v175_v37 = vmax.f32 %v143_v30, %v1176_v27  ;;  %v1218_v42 = vld [vmem:[%s2014_s0 + $0x37] ss:$9 sm:$0x3]  ;;  %v1026_v43 = vld [vmem:[%s2014_s0 + $0x5] ss:$9 sm:$0x3]  ;;  %v50_v44 = vmax.f32 %v1199_v36, %v1205_v39 }
   0xe   :  { %v241_v34 = vmax.f32 %v209_v26, %v1166_v21  ;;  %v1229_v47 = vld [vmem:[%s2014_s0 + $0x38] ss:$9 sm:$0x3]  ;;  %v141_v48 = vmax.f32 %v109_v38, %v1018_v35  ;;  %v1234_v49 = vld [vmem:[%s2014_s0 + $0x7b] ss:$9 sm:$0x3]  ;;  %v149_v62 = vmin.f32 %v117_v45, %v1018_v35 }
   0xf   :  { %v207_v46 = vmax.f32 %v175_v37, %v1190_v31  ;;  %v1034_v50 = vld [vmem:[%s2014_s0 + $0x6] ss:$9 sm:$0x3]  ;;  %v82_v51 = vmax.f32 %v50_v44, %v1210_v40  ;;  %v1245_v52 = vld [vmem:[%s2014_s0 + $0x7c] ss:$9 sm:$0x3] }
  0x10   :  { %v1213_v41 = vmax.f32 %v241_v34, %v1184_v29  ;;  %v173_v54 = vmax.f32 %v141_v48, %v1026_v43  ;;  %v989_v55 = vld [vmem:[%s2014_s0 + $0x48] ss:$9 sm:$0x3]  ;;  %v997_v56 = vld [vmem:[%s2014_s0 + $0x49] ss:$9 sm:$0x3]  ;;  %v181_v30 = vmin.f32 %v149_v62, %v1026_v43 }
  0x11   :  { %v239_v53 = vmax.f32 %v207_v46, %v1218_v42  ;;  %v1259_v58 = vld [vmem:[%s2014_s0 + $0x7] ss:$9 sm:$0x3]  ;;  %v114_v59 = vmax.f32 %v82_v51, %v1234_v49  ;;  %v48_v60 = vmax.f32 %v989_v55, %v997_v56  ;;  %v1005_v61 = vld [vmem:[%s2014_s0 + $0x4a] ss:$9 sm:$0x3]  ;;  %v56_v63 = vmin.f32 %v989_v55, %v997_v56 }
  0x12   :  { %301 = vrot.lane.b32.xlu2 %v1213_v41, %s1068_s4  ;;  %v205_v5 = vmax.f32 %v173_v54, %v1034_v50  ;;  %v1271_v7 = vld [vmem:[%s2014_s0 + $0x7d] ss:$9 sm:$0x3]  ;;  %v1013_v8 = vld [vmem:[%s2014_s0 + $0x4b] ss:$9 sm:$0x3] }
  0x13   :  { %v1266_v2 = vmax.f32 %v239_v53, %v1229_v47  ;;  %v1279_v9 = vld [vmem:[%s2014_s0 + $0x8] ss:$9 sm:$0x3]  ;;  %v146_v12 = vmax.f32 %v114_v59, %v1245_v52  ;;  %v1285_v13 = vld [vmem:[%s2014_s0 + $0x7e] ss:$9 sm:$0x3]  ;;  %v80_v16 = vmax.f32 %v48_v60, %v1005_v61  ;;  %v88_v18 = vmin.f32 %v56_v63, %v1005_v61 }
  0x14   :  { %v237_v19 = vmax.f32 %v205_v5, %v1259_v58  ;;  %v1021_v20 = vld [vmem:[%s2014_s0 + $0x4c] ss:$9 sm:$0x3]  ;;  %v987_v22 = vld [vmem:[%s2014_s0 + $0x18] ss:$9 sm:$0x3]  ;;  %v119_v53 = vmin.f32 %v87_v23, %v1143_v14  ;;  %v213_v59 = vmin.f32 %v181_v30, %v1034_v50  ;;  %v58_v5 = vmin.f32 %v1199_v36, %v1205_v39 }
  0x15   :  { %297 = vrot.lane.b32.xlu1 %v1266_v2, %s1068_s4  ;;  %v178_v24 = vmax.f32 %v146_v12, %v1271_v7  ;;  %v112_v25 = vmax.f32 %v80_v16, %v1013_v8  ;;  %v995_v26 = vld [vmem:[%s2014_s0 + $0x19] ss:$9 sm:$0x3]  ;;  %v1003_v28 = vld [vmem:[%s2014_s0 + $0x1a] ss:$9 sm:$0x3]  ;;  %v120_v32 = vmin.f32 %v88_v18, %v1013_v8 }
  0x16   :  { %v1305_v33 = vmax.f32 %v237_v19, %v1279_v9  ;;  %v1310_v10 = vld [vmem:[%s2014_s0 + $0x7f] ss:$9 sm:$0x3]  ;;  %v1029_v34 = vld [vmem:[%s2014_s0 + $0x4d] ss:$9 sm:$0x3]  ;;  %v46_v35 = vmax.f32 %v987_v22, %v995_v26  ;;  %v54_v45 = vmin.f32 %v987_v22, %v995_v26  ;;  %v151_v26 = vmin.f32 %v119_v53, %v1154_v17 }
  0x17   :  { %v210_v37 = vmax.f32 %v178_v24, %v1285_v13  ;;  %v1319_v38 = vld [vmem:[%s2014_s0 + $0x80] ss:$9 sm:$0x3]  ;;  %v144_v43 = vmax.f32 %v112_v25, %v1021_v20  ;;  %v1324_v44 = vld [vmem:[%s2014_s0 + $0x1b] ss:$9 sm:$0x3]  ;;  %v152_v60 = vmin.f32 %v120_v32, %v1021_v20  ;;  %v245_v24 = vmin.f32 %v213_v59, %v1259_v58 }
  0x18   :  { %293 = vrot.lane.b32.xlu0 %v1305_v33, %s1068_s4  ;;  %v1037_v46 = vld [vmem:[%s2014_s0 + $0x4e] ss:$9 sm:$0x3]  ;;  %v78_v48 = vmax.f32 %v46_v35, %v1003_v28  ;;  %v1019_v51 = vld [vmem:[%s2014_s0 + $0x1c] ss:$9 sm:$0x3]  ;;  %v86_v18 = vmin.f32 %v54_v45, %v1003_v28  ;;  %v90_v58 = vmin.f32 %v58_v5, %v1210_v40  ;;  %v57_v53 = vmin.f32 %v1091_v0, %v1096_v1 }
  0x19   :  { %v242_v54 = vmax.f32 %v210_v37, %v1310_v10  ;;  %v176_v55 = vmax.f32 %v144_v43, %v1029_v34  ;;  %v1339_v56 = vld [vmem:[%s2014_s0 + $0xa8] ss:$9 sm:$0x3]  ;;  %v1344_v57 = vld [vmem:[%s2014_s0 + $0xa9] ss:$9 sm:$0x3]  ;;  %v184_v28 = vmin.f32 %v152_v60, %v1029_v34  ;;  %v1439_v1 = vmin.f32 %v245_v24, %v1279_v9 }
  0x1a   :  { %v1349_v61 = vld [vmem:[%s2014_s0 + $0x4f] ss:$9 sm:$0x3]  ;;  %v110_v14 = vmax.f32 %v78_v48, %v1324_v44  ;;  %v52_v62 = vmax.f32 %v1339_v56, %v1344_v57  ;;  %v1357_v63 = vld [vmem:[%s2014_s0 + $0xaa] ss:$9 sm:$0x3]  ;;  %v118_v48 = vmin.f32 %v86_v18, %v1324_v44 }
  0x1b   :  { %v1362_v50 = vmax.f32 %v242_v54, %v1319_v38  ;;  %v208_v8 = vmax.f32 %v176_v55, %v1037_v46  ;;  %v1367_v12 = vld [vmem:[%s2014_s0 + $0x1d] ss:$9 sm:$0x3]  ;;  %v1372_v16 = vld [vmem:[%s2014_s0 + $0xab] ss:$9 sm:$0x3] }
  0x1c   :  { %v1377_v19 = vld [vmem:[%s2014_s0 + $0x50] ss:$9 sm:$0x3]  ;;  %v142_v36 = vmax.f32 %v110_v14, %v1019_v51  ;;  %v1382_v39 = vld [vmem:[%s2014_s0 + $0x1e] ss:$9 sm:$0x3]  ;;  %v84_v20 = vmax.f32 %v52_v62, %v1357_v63  ;;  %v183_v14 = vmin.f32 %v151_v26, %v1176_v27  ;;  %v216_v62 = vmin.f32 %v184_v28, %v1037_v46 }
  0x1d   :  { %303 = vrot.lane.b32.xlu2 %v1362_v50, %s1068_s4  ;;  %v240_v22 = vmax.f32 %v208_v8, %v1349_v61  ;;  %v1391_v23 = vld [vmem:[%s2014_s0 + $0xac] ss:$9 sm:$0x3]  ;;  %v992_v25 = vld [vmem:[%s2014_s0 + $0x90] ss:$9 sm:$0x3]  ;;  %v150_v24 = vmin.f32 %v118_v48, %v1019_v51  ;;  %v89_v27 = vmin.f32 %v57_v53, %v1103_v3 }
  0x1e   :  { %v174_v30 = vmax.f32 %v142_v36, %v1367_v12  ;;  %v116_v32 = vmax.f32 %v84_v20, %v1372_v16  ;;  %v1000_v35 = vld [vmem:[%s2014_s0 + $0x91] ss:$9 sm:$0x3]  ;;  %v1008_v37 = vld [vmem:[%s2014_s0 + $0x92] ss:$9 sm:$0x3]  ;;  %v122_v36 = vmin.f32 %v90_v58, %v1234_v49  ;;  %v248_v51 = vmin.f32 %v216_v62, %v1349_v61 }
  0x1f   :  { %v1408_v43 = vmax.f32 %v240_v22, %v1377_v19  ;;  %v1413_v17 = vld [vmem:[%s2014_s0 + $0x1f] ss:$9 sm:$0x3]  ;;  %v1418_v34 = vld [vmem:[%s2014_s0 + $0xad] ss:$9 sm:$0x3]  ;;  %v51_v45 = vmax.f32 %v992_v25, %v1000_v35  ;;  %v59_v59 = vmin.f32 %v992_v25, %v1000_v35  ;;  %v215_v35 = vmin.f32 %v183_v14, %v1190_v31 }
  0x20   :  { %v206_v40 = vmax.f32 %v174_v30, %v1382_v39  ;;  %v148_v54 = vmax.f32 %v116_v32, %v1391_v23  ;;  %v1016_v55 = vld [vmem:[%s2014_s0 + $0x93] ss:$9 sm:$0x3]  ;;  %v1051_v60 = vld [vmem:[%s2014_s0 + $0x20] ss:$9 sm:$0x3]  ;;  %v182_v48 = vmin.f32 %v150_v24, %v1367_v12  ;;  %v121_v53 = vmin.f32 %v89_v27, %v1108_v4 }
  0x21   :  { %299 = vrot.lane.b32.xlu1 %v1408_v43, %s1068_s4  ;;  %v1436_v0 = vld [vmem:[%s2014_s0 + $0xae] ss:$9 sm:$0x3]  ;;  %v83_v44 = vmax.f32 %v51_v45, %v1008_v37  ;;  %v1024_v18 = vld [vmem:[%s2014_s0 + $0x94] ss:$9 sm:$0x3]  ;;  %v91_v20 = vmin.f32 %v59_v59, %v1008_v37  ;;  %v154_v37 = vmin.f32 %v122_v36, %v1245_v52  ;;  %v60_v61 = vmin.f32 %v1339_v56, %v1344_v57 }
  0x22   :  { %v238_v5 = vmax.f32 %v206_v40, %v1413_v17  ;;  %v180_v8 = vmax.f32 %v148_v54, %v1418_v34  ;;  %v1451_v9 = vld [vmem:[%s2014_s0 + $0xaf] ss:$9 sm:$0x3]  ;;  %v1032_v26 = vld [vmem:[%s2014_s0 + $0x95] ss:$9 sm:$0x3]  ;;  %v1484_v31 = vmin.f32 %v248_v51, %v1377_v19  ;;  %v247_v52 = vmin.f32 %v215_v35, %v1218_v42 }
  0x23   :  { %v115_v22 = vmax.f32 %v83_v44, %v1016_v55  ;;  %v123_v28 = vmin.f32 %v91_v20, %v1016_v55  ;;  %v1057_v49 = vld [vmem:[%s2014_s0 + $0xb0] ss:$9 sm:$0x3]  ;;  %v1040_v32 = vld [vmem:[%s2014_s0 + $0x96] ss:$9 sm:$0x3]  ;;  %v186_v56 = vmin.f32 %v154_v37, %v1271_v7  ;;  %v214_v44 = vmin.f32 %v182_v48, %v1382_v39 }
  0x24   :  { %v1454_v46 = vmax.f32 %v238_v5, %v1051_v60  ;;  %v212_v25 = vmax.f32 %v180_v8, %v1436_v0  ;;  %v1048_v54 = vld [vmem:[%s2014_s0 + $0x97] ss:$9 sm:$0x3]  ;;  %v1056_v4 = vld [vmem:[%s2014_s0 + $0x98] ss:$9 sm:$0x3]  ;;  %v153_v14 = vmin.f32 %v121_v53, %v1114_v6  ;;  %v92_v19 = vmin.f32 %v60_v61, %v1357_v63 }
  0x25   :  { %333 = vrot.lane.b32.xlu2 %v1439_v1, %s1068_s4  ;;  %v147_v30 = vmax.f32 %v115_v22, %v1024_v18  ;;  %v155_v58 = vmin.f32 %v123_v28, %v1024_v18  ;;  %v1501_v8 = vmin.f32 %v247_v52, %v1229_v47  ;;  %v218_v42 = vmin.f32 %v186_v56, %v1285_v13  ;;  %s1069_s0 = smov 126   ;;  %s1072_s10 = smov 123  }
  0x26   :  { %295 = vrot.lane.b32.xlu0 %v1454_v46, %s1068_s4  ;;  %v244_v3 = vmax.f32 %v212_v25, %v1451_v9  ;;  %v246_v7 = vmin.f32 %v214_v44, %v1413_v17  ;;  %v185_v6 = vmin.f32 %v153_v14, %v1135_v11  ;;  %v124_v63 = vmin.f32 %v92_v19, %v1372_v16  ;;  %s1073_s11 = smov 122   ;;  %s1074_s12 = smov 121  }
  0x27   :  { %v179_v45 = vmax.f32 %v147_v30, %v1032_v26  ;;  %v187_v55 = vmin.f32 %v155_v58, %v1032_v26  ;;  %v250_v18 = vmin.f32 %v218_v42, %v1310_v10  ;;  %s1075_s13 = smov 120   ;;  %vm967_vm10 = vcmask 1042434  }
  0x28   :  { %v1478_v40 = vmax.f32 %v244_v3, %v1057_v49  ;;  %v1514_v47 = vmin.f32 %v246_v7, %v1051_v60  ;;  %v217_v13 = vmin.f32 %v185_v6, %v1148_v15  ;;  %v156_v36 = vmin.f32 %v124_v63, %v1391_v23 }
  0x29   :  { %v211_v59 = vmax.f32 %v179_v45, %v1040_v32  ;;  %v219_v57 = vmin.f32 %v187_v55, %v1040_v32  ;;  %v1521_v11 = vmin.f32 %v250_v18, %v1319_v38  ;;  %vm969_vm11 = vcmask 1043459  }
  0x2a   :  { %307 = vrot.lane.b32.xlu1 %v1478_v40, %s1068_s4  ;;  %v249_v16 = vmin.f32 %v217_v13, %v1166_v21  ;;  %v188_v17 = vmin.f32 %v156_v36, %v1418_v34  ;;  %vm971_vm12 = vcmask 1044484   ;;  %vm973_vm13 = vcmask 1045509  }
  0x2b   :  { %v243_v12 = vmax.f32 %v211_v59, %v1048_v54  ;;  %v251_v5 = vmin.f32 %v219_v57, %v1048_v54  ;;  %vm975_vm14 = vcmask 1046534   ;;  %vm977_vm15 = vcmask 1047559  }
  0x2c   :  { %v1530_v15 = vmin.f32 %v249_v16, %v1184_v29  ;;  %v220_v10 = vmin.f32 %v188_v17, %v1436_v0 }
  0x2d   :  { %v1496_v62 = vmax.f32 %v243_v12, %v1056_v4  ;;  %339 = vrot.lane.b32.xlu2 %v1484_v31, %s1068_s4  ;;  %v1509_v39 = vmin.f32 %v251_v5, %v1056_v4 }
  0x2e   :  { %v252_v38 = vmin.f32 %v220_v10, %v1451_v9 }
  0x2f   :  { %305 = vrot.lane.b32.xlu0 %v1496_v62, %s1068_s4 }
  0x30   :  { %v1538_v21 = vmin.f32 %v252_v38, %v1057_v49 }
  0x32   :  { %337 = vrot.lane.b32.xlu1 %v1501_v8, %s1068_s4 }
  0x35   :  { %345 = vrot.lane.b32.xlu2 %v1509_v39, %s1068_s4 }
  0x37   :  { %335 = vrot.lane.b32.xlu0 %v1514_v47, %s1068_s4 }
  0x3a   :  { %343 = vrot.lane.b32.xlu1 %v1521_v11, %s1068_s4 }
  0x3d   :  { %367 = vrot.lane.b32.xlu2 %v1454_v46, %s1069_s0 }
  0x3f   :  { %341 = vrot.lane.b32.xlu0 %v1530_v15, %s1068_s4 }
  0x42   :  { %365 = vrot.lane.b32.xlu1 %v1305_v33, %s1069_s0 }
  0x45   :  { %373 = vrot.lane.b32.xlu2 %v1213_v41, %s1069_s0 }
  0x47   :  { %347 = vrot.lane.b32.xlu0 %v1538_v21, %s1068_s4  ;;  %s1070_s4 = smov 125  }
  0x4a   :  { %371 = vrot.lane.b32.xlu1 %v1408_v43, %s1069_s0 }
  0x4d   :  { %379 = vrot.lane.b32.xlu2 %v1478_v40, %s1069_s0 }
  0x4f   :  { %369 = vrot.lane.b32.xlu0 %v1266_v2, %s1069_s0 }
  0x52   :  { %377 = vrot.lane.b32.xlu1 %v1496_v62, %s1069_s0 }
  0x55   :  { %401 = vrot.lane.b32.xlu2 %v1501_v8, %s1069_s0 }
  0x57   :  { %375 = vrot.lane.b32.xlu0 %v1362_v50, %s1069_s0 }
  0x5a   :  { %399 = vrot.lane.b32.xlu1 %v1514_v47, %s1069_s0 }
  0x5d   :  { %407 = vrot.lane.b32.xlu2 %v1521_v11, %s1069_s0 }
  0x5f   :  { %397 = vrot.lane.b32.xlu0 %v1439_v1, %s1069_s0 }
  0x62   :  { %405 = vrot.lane.b32.xlu1 %v1530_v15, %s1069_s0 }
  0x65   :  { %429 = vrot.lane.b32.xlu2 %v1305_v33, %s1070_s4 }
  0x67   :  { %403 = vrot.lane.b32.xlu0 %v1484_v31, %s1069_s0 }
  0x6a   :  { %411 = vrot.lane.b32.xlu1 %v1538_v21, %s1069_s0 }
  0x6c   :  { %v302_v29 = vpop.permute.xlu2 %301 }
  0x6d   :  { %435 = vrot.lane.b32.xlu2 %v1408_v43, %s1070_s4  ;;  %v321_v49 = vmax.f32 %v1213_v41, %v302_v29 }
  0x6f   :  { %409 = vrot.lane.b32.xlu0 %v1509_v39, %s1069_s0 }
  0x72   :  { %433 = vrot.lane.b32.xlu1 %v1266_v2, %s1070_s4 }
  0x75   :  { %441 = vrot.lane.b32.xlu2 %v1496_v62, %s1070_s4 }
  0x77   :  { %431 = vrot.lane.b32.xlu0 %v1454_v46, %s1070_s4  ;;  %v1561_v23 = vpop.permute.xlu2 %303 }
  0x78   :  { %v322_v10 = vmax.f32 %v1362_v50, %v1561_v23 }
  0x7a   :  { %439 = vrot.lane.b32.xlu1 %v1362_v50, %s1070_s4 }
  0x7d   :  { %463 = vrot.lane.b32.xlu2 %v1514_v47, %s1070_s4 }
  0x7f   :  { %437 = vrot.lane.b32.xlu0 %v1213_v41, %s1070_s4  ;;  %v1566_v34 = vpop.permute.xlu2 %333 }
  0x82   :  { %461 = vrot.lane.b32.xlu1 %v1439_v1, %s1070_s4 }
  0x85   :  { %469 = vrot.lane.b32.xlu2 %v1530_v15, %s1070_s4 }
  0x87   :  { %443 = vrot.lane.b32.xlu0 %v1478_v40, %s1070_s4  ;;  %v1571_v60 = vpop.permute.xlu2 %339  ;;  %v298_v0 = vpop.permute.xlu1 %297 }
  0x88   :  { %v319_v7 = vmax.f32 %v1266_v2, %v298_v0 }
  0x8a   :  { %467 = vrot.lane.b32.xlu1 %v1484_v31, %s1070_s4  ;;  %v294_v20 = vpop.permute.xlu0 %293 }
  0x8b   :  { %v317_v59 = vmax.f32 %v1305_v33, %v294_v20 }
  0x8d   :  { %475 = vrot.lane.b32.xlu2 %v1538_v21, %s1070_s4 }
  0x8f   :  { %465 = vrot.lane.b32.xlu0 %v1501_v8, %s1070_s4  ;;  %v1576_v9 = vpop.permute.xlu2 %345 }
  0x92   :  { %473 = vrot.lane.b32.xlu1 %v1509_v39, %s1070_s4 }
  0x93   :  { %v300_v22 = vpop.permute.xlu1 %299 }
  0x94   :  { %v320_v14 = vmax.f32 %v1408_v43, %v300_v22 }
  0x95   :  { %497 = vrot.lane.b32.xlu2 %v1266_v2, %s1071_s9 }
  0x97   :  { %471 = vrot.lane.b32.xlu0 %v1521_v11, %s1070_s4  ;;  %v368_v24 = vpop.permute.xlu2 %367 }
  0x98   :  { %v296_v27 = vpop.permute.xlu0 %295 }
  0x99   :  { %v318_v25 = vmax.f32 %v1454_v46, %v296_v27  ;;  %v357_v27 = vmin.f32 %v1439_v1, %v1566_v34 }
  0x9a   :  { %495 = vrot.lane.b32.xlu1 %v1454_v46, %s1071_s9 }
  0x9b   :  { %v1585_v26 = vmax.f32 %v318_v25, %v368_v24 }
  0x9c   :  { %v308_v28 = vpop.permute.xlu1 %307 }
  0x9d   :  { %503 = vrot.lane.b32.xlu2 %v1362_v50, %s1071_s9  ;;  %v324_v35 = vmax.f32 %v1478_v40, %v308_v28 }
  0x9f   :  { %493 = vrot.lane.b32.xlu0 %v1305_v33, %s1071_s9  ;;  %v374_v30 = vpop.permute.xlu2 %373 }
  0xa0   :  { %v1592_v51 = vmax.f32 %v321_v49, %v374_v30 }
  0xa1   :  { %v306_v3 = vpop.permute.xlu0 %305 }
  0xa2   :  { %501 = vrot.lane.b32.xlu1 %v1213_v41, %s1071_s9  ;;  %v323_v13 = vmax.f32 %v1496_v62, %v306_v3 }
  0xa4   :  { %v338_v32 = vpop.permute.xlu1 %337 }
  0xa5   :  { %525 = vrot.lane.b32.xlu2 %v1439_v1, %s1071_s9  ;;  %v359_v53 = vmin.f32 %v1501_v8, %v338_v32 }
  0xa7   :  { %499 = vrot.lane.b32.xlu0 %v1408_v43, %s1071_s9  ;;  %v380_v37 = vpop.permute.xlu2 %379 }
  0xa8   :  { %v1601_v58 = vmax.f32 %v324_v35, %v380_v37  ;;  %v360_v35 = vmin.f32 %v1484_v31, %v1571_v60 }
  0xa9   :  { %v336_v45 = vpop.permute.xlu0 %335 }
  0xaa   :  { %507 = vrot.lane.b32.xlu1 %v1478_v40, %s1071_s9  ;;  %v358_v20 = vmin.f32 %v1514_v47, %v336_v45 }
  0xac   :  { %v344_v48 = vpop.permute.xlu1 %343 }
  0xad   :  { %531 = vrot.lane.b32.xlu2 %v1484_v31, %s1071_s9  ;;  %v362_v56 = vmin.f32 %v1521_v11, %v344_v48 }
  0xaf   :  { %505 = vrot.lane.b32.xlu0 %v1496_v62, %s1071_s9  ;;  %v402_v61 = vpop.permute.xlu2 %401 }
  0xb0   :  { %v1610_v54 = vmin.f32 %v359_v53, %v402_v61 }
  0xb1   :  { %v342_v55 = vpop.permute.xlu0 %341 }
  0xb2   :  { %529 = vrot.lane.b32.xlu1 %v1501_v8, %s1071_s9  ;;  %v361_v30 = vmin.f32 %v1530_v15, %v342_v55 }
  0xb4   :  { %v366_v4 = vpop.permute.xlu1 %365 }
  0xb5   :  { %v1615_v52 = vmax.f32 %v317_v59, %v366_v4  ;;  %537 = vrot.lane.b32.xlu2 %v1509_v39, %s1071_s9  ;;  %v363_v59 = vmin.f32 %v1509_v39, %v1576_v9 }
  0xb7   :  { %527 = vrot.lane.b32.xlu0 %v1514_v47, %s1071_s9  ;;  %v408_v57 = vpop.permute.xlu2 %407 }
  0xb8   :  { %v1622_v12 = vmin.f32 %v362_v56, %v408_v57 }
  0xb9   :  { %v348_v44 = vpop.permute.xlu0 %347 }
  0xba   :  { %535 = vrot.lane.b32.xlu1 %v1521_v11, %s1071_s9  ;;  %v364_v53 = vmin.f32 %v1538_v21, %v348_v44 }
  0xbc   :  { %v372_v19 = vpop.permute.xlu1 %371 }
  0xbd   :  { %v1627_v5 = vmax.f32 %v320_v14, %v372_v19  ;;  %559 = vrot.lane.b32.xlu2 %v1454_v46, %s1072_s10 }
  0xbf   :  { %533 = vrot.lane.b32.xlu0 %v1530_v15, %s1071_s9  ;;  %v1633_v42 = vpop.permute.xlu2 %429 }
  0xc0   :  { %v453_v6 = vmax.f32 %v1615_v52, %v1633_v42 }
  0xc1   :  { %v370_v63 = vpop.permute.xlu0 %369 }
  0xc2   :  { %v391_v18 = vmax.f32 %v319_v7, %v370_v63  ;;  %557 = vrot.lane.b32.xlu1 %v1305_v33, %s1072_s10 }
  0xc4   :  { %v378_v36 = vpop.permute.xlu1 %377 }
  0xc5   :  { %v1641_v16 = vmax.f32 %v323_v13, %v378_v36  ;;  %565 = vrot.lane.b32.xlu2 %v1213_v41, %s1072_s10 }
  0xc7   :  { %539 = vrot.lane.b32.xlu0 %v1538_v21, %s1071_s9  ;;  %v1647_v17 = vpop.permute.xlu2 %435 }
  0xc8   :  { %v456_v38 = vmax.f32 %v1627_v5, %v1647_v17 }
  0xc9   :  { %v376_v29 = vpop.permute.xlu0 %375 }
  0xca   :  { %v394_v0 = vmax.f32 %v322_v10, %v376_v29  ;;  %563 = vrot.lane.b32.xlu1 %v1408_v43, %s1072_s10 }
  0xcc   :  { %v400_v22 = vpop.permute.xlu1 %399 }
  0xcd   :  { %v1656_v24 = vmin.f32 %v358_v20, %v400_v22  ;;  %571 = vrot.lane.b32.xlu2 %v1478_v40, %s1072_s10 }
  0xcf   :  { %561 = vrot.lane.b32.xlu0 %v1266_v2, %s1072_s10  ;;  %v1662_v23 = vpop.permute.xlu2 %441 }
  0xd0   :  { %v459_v25 = vmax.f32 %v1641_v16, %v1662_v23 }
  0xd1   :  { %v398_v28 = vpop.permute.xlu0 %397 }
  0xd2   :  { %v421_v49 = vmin.f32 %v357_v27, %v398_v28  ;;  %569 = vrot.lane.b32.xlu1 %v1496_v62, %s1072_s10 }
  0xd4   :  { %v406_v3 = vpop.permute.xlu1 %405 }
  0xd5   :  { %v1671_v32 = vmin.f32 %v361_v30, %v406_v3  ;;  %593 = vrot.lane.b32.xlu2 %v1501_v8, %s1072_s10 }
  0xd7   :  { %567 = vrot.lane.b32.xlu0 %v1362_v50, %s1072_s10  ;;  %v1677_v34 = vpop.permute.xlu2 %463 }
  0xd8   :  { %v486_v37 = vmin.f32 %v1656_v24, %v1677_v34 }
  0xd9   :  { %v404_v45 = vpop.permute.xlu0 %403 }
  0xda   :  { %v424_v48 = vmin.f32 %v360_v35, %v404_v45  ;;  %591 = vrot.lane.b32.xlu1 %v1514_v47, %s1072_s10 }
  0xdc   :  { %v412_v61 = vpop.permute.xlu1 %411 }
  0xdd   :  { %v1686_v55 = vmin.f32 %v364_v53, %v412_v61  ;;  %599 = vrot.lane.b32.xlu2 %v1521_v11, %s1072_s10 }
  0xdf   :  { %589 = vrot.lane.b32.xlu0 %v1439_v1, %s1072_s10  ;;  %v1692_v60 = vpop.permute.xlu2 %469 }
  0xe0   :  { %v489_v4 = vmin.f32 %v1671_v32, %v1692_v60 }
  0xe1   :  { %v410_v56 = vpop.permute.xlu0 %409 }
  0xe2   :  { %v427_v57 = vmin.f32 %v363_v59, %v410_v56  ;;  %597 = vrot.lane.b32.xlu1 %v1530_v15, %s1072_s10 }
  0xe4   :  { %v434_v44 = vpop.permute.xlu1 %433 }
  0xe5   :  { %v455_v14 = vmax.f32 %v391_v18, %v434_v44  ;;  %621 = vrot.lane.b32.xlu2 %v1305_v33, %s1073_s11 }
  0xe7   :  { %595 = vrot.lane.b32.xlu0 %v1484_v31, %s1072_s10  ;;  %v1704_v19 = vpop.permute.xlu2 %475 }
  0xe8   :  { %v492_v9 = vmin.f32 %v1686_v55, %v1704_v19 }
  0xe9   :  { %v432_v7 = vpop.permute.xlu0 %431 }
  0xea   :  { %v454_v63 = vmax.f32 %v1585_v26, %v432_v7  ;;  %603 = vrot.lane.b32.xlu1 %v1538_v21, %s1072_s10 }
  0xec   :  { %v440_v13 = vpop.permute.xlu1 %439 }
  0xed   :  { %v458_v18 = vmax.f32 %v394_v0, %v440_v13  ;;  %627 = vrot.lane.b32.xlu2 %v1408_v43, %s1073_s11 }
  0xef   :  { %601 = vrot.lane.b32.xlu0 %v1509_v39, %s1072_s10  ;;  %v498_v36 = vpop.permute.xlu2 %497 }
  0xf0   :  { %v1715_v10 = vmax.f32 %v455_v14, %v498_v36 }
  0xf1   :  { %v438_v29 = vpop.permute.xlu0 %437 }
  0xf2   :  { %v457_v20 = vmax.f32 %v1592_v51, %v438_v29  ;;  %625 = vrot.lane.b32.xlu1 %v1266_v2, %s1073_s11 }
  0xf4   :  { %v462_v26 = vpop.permute.xlu1 %461 }
  0xf5   :  { %v485_v22 = vmin.f32 %v421_v49, %v462_v26  ;;  %633 = vrot.lane.b32.xlu2 %v1496_v62, %s1073_s11 }
  0xf7   :  { %623 = vrot.lane.b32.xlu0 %v1454_v46, %s1073_s11  ;;  %v504_v0 = vpop.permute.xlu2 %503 }
  0xf8   :  { %v1724_v27 = vmax.f32 %v458_v18, %v504_v0 }
  0xf9   :  { %v444_v28 = vpop.permute.xlu0 %443 }
  0xfa   :  { %v460_v30 = vmax.f32 %v1601_v58, %v444_v28  ;;  %631 = vrot.lane.b32.xlu1 %v1362_v50, %s1073_s11 }
  0xfc   :  { %v468_v51 = vpop.permute.xlu1 %467 }
  0xfd   :  { %v488_v3 = vmin.f32 %v424_v48, %v468_v51  ;;  %655 = vrot.lane.b32.xlu2 %v1514_v47, %s1073_s11 }
  0xff   :  { %629 = vrot.lane.b32.xlu0 %v1213_v41, %s1073_s11  ;;  %v526_v49 = vpop.permute.xlu2 %525 }
 0x100   :  { %v1733_v35 = vmin.f32 %v485_v22, %v526_v49 }
 0x101   :  { %v466_v45 = vpop.permute.xlu0 %465 }
 0x102   :  { %v487_v53 = vmin.f32 %v1610_v54, %v466_v45  ;;  %653 = vrot.lane.b32.xlu1 %v1439_v1, %s1073_s11 }
 0x104   :  { %v474_v58 = vpop.permute.xlu1 %473 }
 0x105   :  { %v491_v61 = vmin.f32 %v427_v57, %v474_v58  ;;  %661 = vrot.lane.b32.xlu2 %v1530_v15, %s1073_s11 }
 0x107   :  { %635 = vrot.lane.b32.xlu0 %v1478_v40, %s1073_s11  ;;  %v532_v48 = vpop.permute.xlu2 %531 }
 0x108   :  { %v1742_v59 = vmin.f32 %v488_v3, %v532_v48 }
 0x109   :  { %v472_v56 = vpop.permute.xlu0 %471 }
 0x10a   :  { %v490_v44 = vmin.f32 %v1622_v12, %v472_v56  ;;  %659 = vrot.lane.b32.xlu1 %v1484_v31, %s1073_s11 }
 0x10c   :  { %v496_v54 = vpop.permute.xlu1 %495 }
 0x10d   :  { %v1747_v14 = vmax.f32 %v454_v63, %v496_v54  ;;  %667 = vrot.lane.b32.xlu2 %v1538_v21, %s1073_s11 }
 0x10f   :  { %657 = vrot.lane.b32.xlu0 %v1501_v8, %s1073_s11  ;;  %v538_v57 = vpop.permute.xlu2 %537 }
 0x110   :  { %v1753_v7 = vmin.f32 %v491_v61, %v538_v57 }
 0x111   :  { %v494_v13 = vpop.permute.xlu0 %493 }
 0x112   :  { %v517_v12 = vmax.f32 %v453_v6, %v494_v13  ;;  %665 = vrot.lane.b32.xlu1 %v1509_v39, %s1073_s11 }
 0x114   :  { %v502_v18 = vpop.permute.xlu1 %501 }
 0x115   :  { %v1760_v63 = vmax.f32 %v457_v20, %v502_v18  ;;  %689 = vrot.lane.b32.xlu2 %v1266_v2, %s1074_s12 }
 0x117   :  { %663 = vrot.lane.b32.xlu0 %v1521_v11, %s1073_s11  ;;  %v1766_v36 = vpop.permute.xlu2 %559 }
 0x118   :  { %v582_v29 = vmax.f32 %v1747_v14, %v1766_v36 }
 0x119   :  { %v500_v52 = vpop.permute.xlu0 %499 }
 0x11a   :  { %v520_v42 = vmax.f32 %v456_v38, %v500_v52  ;;  %687 = vrot.lane.b32.xlu1 %v1454_v46, %s1074_s12 }
 0x11c   :  { %v508_v6 = vpop.permute.xlu1 %507 }
 0x11d   :  { %v1775_v20 = vmax.f32 %v460_v30, %v508_v6  ;;  %695 = vrot.lane.b32.xlu2 %v1362_v50, %s1074_s12 }
 0x11f   :  { %685 = vrot.lane.b32.xlu0 %v1305_v33, %s1074_s12  ;;  %v1781_v26 = vpop.permute.xlu2 %565 }
 0x120   :  { %v585_v22 = vmax.f32 %v1760_v63, %v1781_v26 }
 0x121   :  { %v506_v0 = vpop.permute.xlu0 %505 }
 0x122   :  { %v523_v5 = vmax.f32 %v459_v25, %v506_v0  ;;  %693 = vrot.lane.b32.xlu1 %v1213_v41, %s1074_s12 }
 0x124   :  { %v530_v17 = vpop.permute.xlu1 %529 }
 0x125   :  { %v1790_v38 = vmin.f32 %v487_v53, %v530_v17  ;;  %719 = vrot.lane.b32.xlu2 %v1514_v47, %s1074_s12 }
 0x127   :  { %691 = vrot.lane.b32.xlu0 %v1408_v43, %s1074_s12  ;;  %v1796_v28 = vpop.permute.xlu2 %571 }
 0x128   :  { %v588_v30 = vmax.f32 %v1775_v20, %v1796_v28  ;;  %v1076_v28 = vmov 0  }
 0x129   :  { %v528_v51 = vpop.permute.xlu0 %527 }
 0x12a   :  { %v1803_v16 = vmin.f32 %v486_v37, %v528_v51  ;;  %717 = vrot.lane.b32.xlu1 %v1439_v1, %s1074_s12 }
 0x12c   :  { %v536_v23 = vpop.permute.xlu1 %535 }
 0x12d   :  { %v1807_v25 = vmin.f32 %v490_v44, %v536_v23  ;;  %749 = vrot.lane.b32.xlu2 %v1305_v33, %s1075_s13 }
 0x12f   :  { %697 = vrot.lane.b32.xlu0 %v1496_v62, %s1074_s12  ;;  %v1813_v3 = vpop.permute.xlu2 %593 }
 0x130   :  { %v615_v24 = vmin.f32 %v1790_v38, %v1813_v3 }
 0x131   :  { %v534_v34 = vpop.permute.xlu0 %533 }
 0x132   :  { %v553_v37 = vmin.f32 %v489_v4, %v534_v34  ;;  %723 = vrot.lane.b32.xlu1 %v1484_v31, %s1074_s12 }
 0x134   :  { %v558_v49 = vpop.permute.xlu1 %557 }
 0x135   :  { %v581_v45 = vmax.f32 %v517_v12, %v558_v49  ;;  %783 = vrot.lane.b32.xlu2 %v1514_v47, %s1075_s13 }
 0x137   :  { %721 = vrot.lane.b32.xlu0 %v1501_v8, %s1074_s12  ;;  %v1826_v33 = vpop.permute.xlu2 %599 }
 0x138   :  { %v618_v53 = vmin.f32 %v1807_v25, %v1826_v33 }
 0x139   :  { %v540_v58 = vpop.permute.xlu0 %539 }
 0x13a   :  { %v556_v32 = vmin.f32 %v492_v9, %v540_v58  ;;  %781 = vrot.lane.b32.xlu1 %v1439_v1, %s1075_s13 }
 0x13c   :  { %v564_v60 = vpop.permute.xlu1 %563 }
 0x13d   :  { %v584_v4 = vmax.f32 %v520_v42, %v564_v60  ;;  %785 = vrot.lane.b32.xlu2 %v1501_v8, %s1075_s13 }
 0x13f   :  { %751 = vrot.lane.b32.xlu0 %v1454_v46, %s1075_s13  ;;  %v622_v47 = vpop.permute.xlu2 %621 }
 0x140   :  { %v1839_v61 = vmax.f32 %v581_v45, %v622_v47 }
 0x141   :  { %v562_v48 = vpop.permute.xlu0 %561 }
 0x142   :  { %v583_v56 = vmax.f32 %v1715_v10, %v562_v48  ;;  %753 = vrot.lane.b32.xlu1 %v1266_v2, %s1075_s13 }
 0x144   :  { %v570_v55 = vpop.permute.xlu1 %569 }
 0x145   :  { %v587_v19 = vmax.f32 %v523_v5, %v570_v55  ;;  %787 = vrot.lane.b32.xlu2 %v1484_v31, %s1075_s13 }
 0x147   :  { %725 = vrot.lane.b32.xlu0 %v1530_v15, %s1074_s12  ;;  %v628_v1 = vpop.permute.xlu2 %627 }
 0x148   :  { %v1848_v8 = vmax.f32 %v584_v4, %v628_v1 }
 0x149   :  { %v568_v46 = vpop.permute.xlu0 %567 }
 0x14a   :  { %v586_v9 = vmax.f32 %v1724_v27, %v568_v46  ;;  %755 = vrot.lane.b32.xlu1 %v1408_v43, %s1075_s13 }
 0x14c   :  { %v1853_v10 = vpop.permute.xlu1 %591 }
 0x14d   :  { %v614_v2 = vmin.f32 %v1803_v16, %v1853_v10  ;;  %789 = vrot.lane.b32.xlu2 %v1530_v15, %s1075_s13 }
 0x14f   :  { %727 = vrot.lane.b32.xlu0 %v1521_v11, %s1074_s12  ;;  %v634_v31 = vpop.permute.xlu2 %633 }
 0x150   :  { %v1861_v44 = vmax.f32 %v587_v19, %v634_v31 }
 0x151   :  { %v1863_v54 = vpop.permute.xlu0 %589 }
 0x152   :  { %v613_v27 = vmin.f32 %v1733_v35, %v1863_v54  ;;  %757 = vrot.lane.b32.xlu1 %v1213_v41, %s1075_s13 }
 0x154   :  { %v598_v43 = vpop.permute.xlu1 %597 }
 0x155   :  { %v617_v57 = vmin.f32 %v553_v37, %v598_v43  ;;  %759 = vrot.lane.b32.xlu2 %v1362_v50, %s1075_s13 }
 0x157   :  { %729 = vrot.lane.b32.xlu0 %v1509_v39, %s1074_s12  ;;  %v1873_v15 = vpop.permute.xlu2 %655 }
 0x159   :  { %v1875_v13 = vpop.permute.xlu0 %595 }
 0x15a   :  { %v616_v12 = vmin.f32 %v1742_v59, %v1875_v13  ;;  %731 = vrot.lane.b32.xlu1 %v1538_v21, %s1074_s12 }
 0x15c   :  { %v604_v18 = vpop.permute.xlu1 %603 }
 0x15d   :  { %v620_v41 = vmin.f32 %v556_v32, %v604_v18  ;;  %793 = vrot.lane.b32.xlu2 %v1509_v39, %s1075_s13 }
 0x15f   :  { %699 = vrot.lane.b32.xlu0 %v1478_v40, %s1074_s12  ;;  %v662_v50 = vpop.permute.xlu2 %661 }
 0x160   :  { %v1885_v52 = vmin.f32 %v617_v57, %v662_v50 }
 0x161   :  { %v602_v42 = vpop.permute.xlu0 %601 }
 0x162   :  { %v619_v6 = vmin.f32 %v1753_v7, %v602_v42  ;;  %761 = vrot.lane.b32.xlu1 %v1496_v62, %s1075_s13 }
 0x164   :  { %v626_v0 = vpop.permute.xlu1 %625 }
 0x165   :  { %v1890_v5 = vmax.f32 %v583_v56, %v626_v0 }
 0x167   :  { %791 = vrot.lane.b32.xlu0 %v1521_v11, %s1075_s13  ;;  %v668_v17 = vpop.permute.xlu2 %667 }
 0x168   :  { %v1894_v39 = vmin.f32 %v620_v41, %v668_v17 }
 0x169   :  { %v624_v51 = vpop.permute.xlu0 %623 }
 0x16a   :  { %v1899_v23 = vmax.f32 %v582_v29, %v624_v51  ;;  %795 = vrot.lane.b32.xlu1 %v1538_v21, %s1075_s13 }
 0x16c   :  { %v632_v7 = vpop.permute.xlu1 %631 }
 0x16d   :  { %v1903_v62 = vmax.f32 %v586_v9, %v632_v7 }
 0x16f   :  { %763 = vrot.lane.b32.xlu0 %v1478_v40, %s1075_s13  ;;  %v1907_v34 = vpop.permute.xlu2 %689  ;;  %v821_v40 = vlaneseq }
 0x170   :  { %v711_v16 = vmax.f32 %v1890_v5, %v1907_v34 }
 0x171   :  { %v630_v11 = vpop.permute.xlu0 %629  ;;  %v822_v58 = vand.u32 127, %v821_v40 }
 0x172   :  { %v1912_v37 = vmax.f32 %v585_v22, %v630_v11 }
 0x173   :  { %v826_v32 = vand.u32 65535, %v822_v58  ;;  %v827_v63 = vshrl.u32 %v822_v58, 16 }
 0x174   :  { %v654_v14 = vpop.permute.xlu1 %653 }
 0x175   :  { %v830_v26 = vmul.u32 58254, %v826_v32  ;;  %v829_v60 = vmul.u32 14564, %v826_v32  ;;  %v831_v4 = vmul.u32 14564, %v827_v63  ;;  %v832_v20 = vmul.u32 58254, %v827_v63 }
 0x176   :  { %v677_v63 = vmin.f32 %v613_v27, %v654_v14 }
 0x177   :  { %v1914_v36 = vpop.permute.xlu2 %695  ;;  %v833_v47 = vshll.u32 %v830_v26, 16  ;;  %v835_v56 = vshll.u32 %v831_v4, 16  ;;  %v834_v18 = vshrl.u32 %v830_v26, 16  ;;  %v836_v42 = vshrl.u32 %v831_v4, 16 }
 0x178   :  { %v714_v21 = vmax.f32 %v1903_v62, %v1914_v36 }
 0x179   :  { %v636_v29 = vpop.permute.xlu0 %635  ;;  %vm837_vm0 = vc.u32 %v829_v60, %v833_v47  ;;  %v839_v19 = vadd.s32 %v833_v47, %v829_v60 }
 0x17a   :  { %v1921_v49 = vmax.f32 %v588_v30, %v636_v29  ;;  %v838_v30 = vsel %vm837_vm0, 1, %v1076_v28 }
 0x17b   :  { %vm841_vm1 = vc.u32 %v839_v19, %v835_v56  ;;  %v840_v9 = vadd.s32 %v838_v30, %v832_v20 }
 0x17c   :  { %v1923_v45 = vpop.permute.xlu1 %659  ;;  %v842_v43 = vsel %vm841_vm1, 1, %v1076_v28 }
 0x17d   :  { %v844_v41 = vadd.s32 %v842_v43, %v840_v9 }
 0x17f   :  { %v720_v57 = vpop.permute.xlu2 %719 }
 0x181   :  { %v658_v22 = vpop.permute.xlu0 %657 }
 0x182   :  { %v679_v35 = vmin.f32 %v615_v24, %v658_v22 }
 0x184   :  { %v666_v48 = vpop.permute.xlu1 %665 }
 0x185   :  { %v1925_v55 = vmin.f32 %v619_v6, %v666_v48  ;;  %v845_v6 = vadd.s32 %v844_v41, %v834_v18 }
 0x187   :  { %v846_v17 = vadd.s32 %v845_v6, %v836_v42  ;;  %v750_v51 = vpop.permute.xlu2 %749 }
 0x189   :  { %v664_v1 = vpop.permute.xlu0 %663  ;;  %v847_v11 = vshrl.u32 %v846_v17, 3 }
 0x18a   :  { %v1930_v46 = vmin.f32 %v618_v53, %v664_v1 }
 0x18b   :  { %v848_v40 = vmul.u32 9, %v847_v11 }
 0x18c   :  { %v688_v31 = vpop.permute.xlu1 %687 }
 0x18d   :  { %v849_v53 = vsub.s32 %v822_v58, %v848_v40  ;;  %v678_v58 = vmin.f32 %v614_v2, %v1873_v15  ;;  %v710_v27 = vmax.f32 %v1899_v23, %v688_v31  ;;  %v680_v31 = vmin.f32 %v616_v12, %v1923_v45 }
 0x18f   :  { %v784_v33 = vpop.permute.xlu2 %783  ;;  %vm852_vm2 = vcmp.ne.s32.totalorder %v849_v53, 0  ;;  %vm853_vm3 = vcmp.lt.s32.totalorder %v849_v53, 0  ;;  %v855_v4 = vadd.s32 9, %v849_v53 }
 0x190   :  { %vm854_vm4 = vmand %vm853_vm3, %vm852_vm2 }
 0x191   :  { %v686_v50 = vpop.permute.xlu0 %685  ;;  %v856_v28 = vsel %vm854_vm4, %v855_v4, %v849_v53 }
 0x192   :  { %v709_v26 = vmax.f32 %v1839_v61, %v686_v50  ;;  %v742_v61 = vmin.f32 %v678_v58, %v720_v57  ;;  %vm1948_vm5 = vcmp.eq.s32.totalorder %v856_v28, 0 }
 0x194   :  { %v1932_v0 = vpop.permute.xlu1 %693  ;;  %v773_v19 = vmax.f32 %v709_v26, %v750_v51  ;;  %v806_v43 = vmin.f32 %v742_v61, %v784_v33 }
 0x195   :  { %v713_v53 = vmax.f32 %v1912_v37, %v1932_v0 }
 0x197   :  { %v786_v48 = vpop.permute.xlu2 %785 }
 0x199   :  { %v692_v7 = vpop.permute.xlu0 %691 }
 0x19a   :  { %v712_v6 = vmax.f32 %v1848_v8, %v692_v7 }
 0x19c   :  { %v718_v29 = vpop.permute.xlu1 %717 }
 0x19d   :  { %v741_v47 = vmin.f32 %v677_v63, %v718_v29 }
 0x19f   :  { %v788_v23 = vpop.permute.xlu2 %787 }
 0x1a1   :  { %v1934_v25 = vpop.permute.xlu0 %697 }
 0x1a2   :  { %v715_v28 = vmax.f32 %v1861_v44, %v1934_v25 }
 0x1a4   :  { %v724_v32 = vpop.permute.xlu1 %723 }
 0x1a5   :  { %v744_v34 = vmin.f32 %v680_v31, %v724_v32 }
 0x1a7   :  { %v808_v59 = vmin.f32 %v744_v34, %v788_v23  ;;  %v790_v45 = vpop.permute.xlu2 %789 }
 0x1a9   :  { %v722_v60 = vpop.permute.xlu0 %721 }
 0x1aa   :  { %v743_v30 = vmin.f32 %v679_v35, %v722_v60 }
 0x1ac   :  { %v782_v56 = vpop.permute.xlu1 %781  ;;  %v807_v2 = vmin.f32 %v743_v30, %v786_v48 }
 0x1ad   :  { %v805_v20 = vmin.f32 %v741_v47, %v782_v56 }
 0x1af   :  { %v813_v54 = vsub.f32 %v773_v19, %v805_v20  ;;  %v760_v48 = vpop.permute.xlu2 %759 }
 0x1b1   :  { %v858_v1 = vmul.f32 %v813_v54, %v813_v54  ;;  %v752_v9 = vpop.permute.xlu0 %751 }
 0x1b2   :  { %v774_v18 = vmax.f32 %v710_v27, %v752_v9  ;;  %v778_v9 = vmax.f32 %v714_v21, %v760_v48 }
 0x1b3   :  { %v866_v38 = vsel %vm1948_vm5, %v858_v1, 0.0 }
 0x1b4   :  { %v814_v3 = vsub.f32 %v774_v18, %v806_v43  ;;  %v754_v24 = vpop.permute.xlu1 %753  ;;  %v875_v10 = vsel %vm874_vm6, %v866_v38, 0.0 }
 0x1b5   :  { %v775_v15 = vmax.f32 %v711_v16, %v754_v24  ;;  %876 = vadd.xlane.f32.xlu2 %v875_v10 }
 0x1b6   :  { %v859_v22 = vmul.f32 %v814_v3, %v814_v3 }
 0x1b7   :  { %v815_v57 = vsub.f32 %v775_v15, %v807_v2  ;;  %v794_v20 = vpop.permute.xlu2 %793 }
 0x1b8   :  { %v867_v5 = vsel %vm1948_vm5, %v859_v22, 0.0 }
 0x1b9   :  { %v860_v41 = vmul.f32 %v815_v57, %v815_v57  ;;  %v726_v50 = vpop.permute.xlu0 %725  ;;  %v878_v42 = vsel %vm874_vm6, %v867_v5, 0.0 }
 0x1ba   :  { %879 = vadd.xlane.f32.xlu0 %v878_v42  ;;  %v745_v29 = vmin.f32 %v1885_v52, %v726_v50 }
 0x1bb   :  { %v868_v17 = vsel %vm1948_vm5, %v860_v41, 0.0 }
 0x1bc   :  { %v756_v51 = vpop.permute.xlu1 %755  ;;  %v881_v11 = vsel %vm874_vm6, %v868_v17, 0.0  ;;  %v809_v63 = vmin.f32 %v745_v29, %v790_v45 }
 0x1bd   :  { %v776_v13 = vmax.f32 %v712_v6, %v756_v51  ;;  %882 = vadd.xlane.f32.xlu1 %v881_v11 }
 0x1bf   :  { %v816_v12 = vsub.f32 %v776_v13, %v808_v59 }
 0x1c1   :  { %v861_v40 = vmul.f32 %v816_v12, %v816_v12  ;;  %v728_v33 = vpop.permute.xlu0 %727 }
 0x1c2   :  { %v746_v27 = vmin.f32 %v1930_v46, %v728_v33 }
 0x1c3   :  { %v869_v8 = vsel %vm1948_vm5, %v861_v40, 0.0 }
 0x1c4   :  { %v758_v7 = vpop.permute.xlu1 %757  ;;  %v884_v32 = vsel %vm874_vm6, %v869_v8, 0.0 }
 0x1c5   :  { %v777_v26 = vmax.f32 %v713_v53, %v758_v7  ;;  %885 = vadd.xlane.f32.xlu2 %v884_v32 }
 0x1c7   :  { %v817_v60 = vsub.f32 %v777_v26, %v809_v63 }
 0x1c9   :  { %v862_v4 = vmul.f32 %v817_v60, %v817_v60  ;;  %v730_v47 = vpop.permute.xlu0 %729 }
 0x1ca   :  { %v747_v37 = vmin.f32 %v1925_v55, %v730_v47 }
 0x1cb   :  { %v870_v52 = vsel %vm1948_vm5, %v862_v4, 0.0 }
 0x1cc   :  { %v732_v56 = vpop.permute.xlu1 %731  ;;  %v887_v19 = vsel %vm874_vm6, %v870_v52, 0.0  ;;  %v811_v35 = vmin.f32 %v747_v37, %v794_v20 }
 0x1cd   :  { %888 = vadd.xlane.f32.xlu2 %v887_v19  ;;  %v748_v25 = vmin.f32 %v1894_v39, %v732_v56 }
 0x1d1   :  { %v700_v0 = vpop.permute.xlu0 %699 }
 0x1d2   :  { %v716_v46 = vmax.f32 %v1921_v49, %v700_v0  ;;  %v1077_v49 = vmov 0.0  }
 0x1d3   :  { %13 = vst.msk [vmem:[%s2015_s1] sm:$0xff] %vm12_vm7, %v1077_v49 }
 0x1d4   :  { %v762_v58 = vpop.permute.xlu1 %761 }
 0x1d5   :  { %v779_v54 = vmax.f32 %v715_v28, %v762_v58 }
 0x1d7   :  { %v819_v61 = vsub.f32 %v779_v54, %v811_v35 }
 0x1d9   :  { %v864_v30 = vmul.f32 %v819_v61, %v819_v61  ;;  %v792_v1 = vpop.permute.xlu0 %791 }
 0x1da   :  { %v810_v43 = vmin.f32 %v746_v27, %v792_v1 }
 0x1db   :  { %v872_v55 = vsel %vm1948_vm5, %v864_v30, 0.0 }
 0x1dc   :  { %v818_v18 = vsub.f32 %v778_v9, %v810_v43  ;;  %v893_v16 = vsel %vm874_vm6, %v872_v55, 0.0  ;;  %v796_v44 = vpop.permute.xlu1 %795 }
 0x1dd   :  { %894 = vadd.xlane.f32.xlu1 %v893_v16  ;;  %v812_v3 = vmin.f32 %v748_v25, %v796_v44 }
 0x1de   :  { %v863_v38 = vmul.f32 %v818_v18, %v818_v18 }
 0x1e0   :  { %v871_v24 = vsel %vm1948_vm5, %v863_v38, 0.0 }
 0x1e1   :  { %v764_v62 = vpop.permute.xlu0 %763  ;;  %v890_v36 = vsel %vm874_vm6, %v871_v24, 0.0 }
 0x1e2   :  { %v780_v21 = vmax.f32 %v716_v46, %v764_v62  ;;  %891 = vadd.xlane.f32.xlu0 %v890_v36 }
 0x1e4   :  { %v820_v10 = vsub.f32 %v780_v21, %v812_v3 }
 0x1e6   :  { %v865_v2 = vmul.f32 %v820_v10, %v820_v10 }
 0x1e8   :  { %v873_v15 = vsel %vm1948_vm5, %v865_v2, 0.0 }
 0x1e9   :  { %v896_v23 = vsel %vm874_vm6, %v873_v15, 0.0 }
 0x1ea   :  { %897 = vadd.xlane.f32.xlu2 %v896_v23 }
 0x228   :  { %v877_v39 = vpop.xlane.xlu2 %876 }
 0x229   :  { %v901_v5 = vsel %vm900_vm8, %v877_v39, 0.0 }
 0x22a   :  { %v902_v42 = vrot.slane %v901_v5, 4 }
 0x22c   :  { %v903_v13 = vadd.f32 %v902_v42, %v901_v5  ;;  %v899_v5 = vld [vmem:[%s2015_s1] sm:$0xff] }
 0x22d   :  { %v880_v31 = vpop.xlane.xlu0 %879 }
 0x22e   :  { %v908_v14 = vsel %vm900_vm8, %v880_v31, 0.0  ;;  %v904_v7 = vrot.slane %v903_v13, 2 }
 0x22f   :  { %v909_v6 = vrot.slane %v908_v14, 4 }
 0x230   :  { %v883_v57 = vpop.xlane.xlu1 %882  ;;  %v905_v52 = vadd.f32 %v904_v7, %v903_v13 }
 0x231   :  { %v915_v41 = vsel %vm900_vm8, %v883_v57, 0.0  ;;  %v910_v12 = vadd.f32 %v909_v6, %v908_v14 }
 0x232   :  { %v916_v51 = vrot.slane %v915_v41, 4  ;;  %v906_v35 = vrot.slane %v905_v52, 1 }
 0x233   :  { %v911_v32 = vrot.slane %v910_v12, 2 }
 0x234   :  { %v917_v45 = vadd.f32 %v916_v51, %v915_v41  ;;  %v907_v16 = vadd.f32 %v906_v35, %v905_v52 }
 0x235   :  { %v912_v56 = vadd.f32 %v911_v32, %v910_v12 }
 0x236   :  { %v918_v63 = vrot.slane %v917_v45, 2 }
 0x237   :  { %v913_v54 = vrot.slane %v912_v56, 1 }
 0x238   :  { %v886_v22 = vpop.xlane.xlu2 %885  ;;  %v919_v37 = vadd.f32 %v918_v63, %v917_v45 }
 0x239   :  { %v922_v50 = vsel %vm900_vm8, %v886_v22, 0.0  ;;  %v914_v44 = vadd.f32 %v913_v54, %v912_v56 }
 0x23a   :  { %v923_v11 = vrot.slane %v922_v50, 4  ;;  %v920_v27 = vrot.slane %v919_v37, 1 }
 0x23b   :  { %v966_v21 = vsel %vm965_vm9, %v914_v44, %v907_v16 }
 0x23c   :  { %v924_v40 = vadd.f32 %v923_v11, %v922_v50  ;;  %v921_v46 = vadd.f32 %v920_v27, %v919_v37 }
 0x23e   :  { %v925_v26 = vrot.slane %v924_v40, 2  ;;  %v968_v15 = vsel %vm967_vm10, %v921_v46, %v966_v21 }
 0x240   :  { %v889_v34 = vpop.xlane.xlu2 %888  ;;  %v926_v0 = vadd.f32 %v925_v26, %v924_v40 }
 0x241   :  { %v929_v17 = vsel %vm900_vm8, %v889_v34, 0.0 }
 0x242   :  { %v930_v59 = vrot.slane %v929_v17, 4  ;;  %v927_v30 = vrot.slane %v926_v0, 1 }
 0x244   :  { %v931_v53 = vadd.f32 %v930_v59, %v929_v17  ;;  %v928_v3 = vadd.f32 %v927_v30, %v926_v0 }
 0x246   :  { %v932_v4 = vrot.slane %v931_v53, 2  ;;  %v970_v23 = vsel %vm969_vm11, %v928_v3, %v968_v15 }
 0x248   :  { %v933_v28 = vadd.f32 %v932_v4, %v931_v53 }
 0x24a   :  { %v934_v43 = vrot.slane %v933_v28, 1 }
 0x24c   :  { %v935_v62 = vadd.f32 %v934_v43, %v933_v28 }
 0x24e   :  { %v972_v22 = vsel %vm971_vm12, %v935_v62, %v970_v23 }
 0x250   :  { %v895_v29 = vpop.xlane.xlu1 %894 }
 0x251   :  { %v943_v33 = vsel %vm900_vm8, %v895_v29, 0.0 }
 0x252   :  { %v944_v8 = vrot.slane %v943_v33, 4 }
 0x254   :  { %v945_v47 = vadd.f32 %v944_v8, %v943_v33 }
 0x255   :  { %v892_v60 = vpop.xlane.xlu0 %891 }
 0x256   :  { %v936_v48 = vsel %vm900_vm8, %v892_v60, 0.0  ;;  %v946_v58 = vrot.slane %v945_v47, 2 }
 0x257   :  { %v937_v19 = vrot.slane %v936_v48, 4 }
 0x258   :  { %v947_v55 = vadd.f32 %v946_v58, %v945_v47 }
 0x259   :  { %v938_v20 = vadd.f32 %v937_v19, %v936_v48 }
 0x25a   :  { %v948_v36 = vrot.slane %v947_v55, 1 }
 0x25b   :  { %v939_v61 = vrot.slane %v938_v20, 2 }
 0x25c   :  { %v949_v49 = vadd.f32 %v948_v36, %v947_v55 }
 0x25d   :  { %v940_v1 = vadd.f32 %v939_v61, %v938_v20  ;;  %v898_v9 = vpop.xlane.xlu2 %897 }
 0x25e   :  { %v950_v18 = vsel %vm900_vm8, %v898_v9, 0.0 }
 0x25f   :  { %v941_v25 = vrot.slane %v940_v1, 1  ;;  %v951_v38 = vrot.slane %v950_v18, 4 }
 0x261   :  { %v952_v24 = vadd.f32 %v951_v38, %v950_v18  ;;  %v942_v10 = vadd.f32 %v941_v25, %v940_v1 }
 0x263   :  { %v953_v2 = vrot.slane %v952_v24, 2  ;;  %v974_v31 = vsel %vm973_vm13, %v942_v10, %v972_v22 }
 0x264   :  { %v976_v34 = vsel %vm975_vm14, %v949_v49, %v974_v31 }
 0x265   :  { %v954_v39 = vadd.f32 %v953_v2, %v952_v24 }
 0x267   :  { %v955_v57 = vrot.slane %v954_v39, 1 }
 0x269   :  { %v956_v14 = vadd.f32 %v955_v57, %v954_v39 }
 0x26b   :  { %v978_v41 = vsel %vm977_vm15, %v956_v14, %v976_v34 }
 0x26c   :  { %v980_v50 = vadd.f32 %v978_v41, %v899_v5 }
 0x26e   :  { %982 = vst.msk [vmem:[%s2015_s1] sm:$0xff] %vm12_vm7, %v980_v50 }

</bundles_post_ra>
